<compile_context>
chip_gen: v7x
topology: tpu7x:2x2x1
jax: 0.10.0
libtpu: 0.0.40
codegen_flags: <defaults>
</compile_context>

<pallas_src>
import functools
import math

import jax
import jax.numpy as jnp
from jax.experimental import pallas as pl
from jax.experimental.pallas import tpu as pltpu


# ----------------------------------------------------------------------------
# Tiling heuristics
# ----------------------------------------------------------------------------
_MAX_LANE_TILE = 16 * 1024            # lane (last-dim) tile cap, multiple of 128
_MIN_GRID_BLOCKS = 2                  # keep both v7x TensorCores fed if possible
_VMEM_MARGIN_BYTES = 6 * 1024 * 1024  # tables + pipeline scratch + slack


@functools.lru_cache(maxsize=None)
def _vmem_limit_bytes() -> int:
    """Scoped-VMEM limit to request: half of physical, capped at 64 MiB.

    v5e/v6e (128 MiB physical) -> 64 MiB, v7x (64 MiB) -> 32 MiB.  Falls back
    to a safe 32 MiB when the query is unavailable.
    """
    try:
        info = pltpu.get_tpu_info()
        phys = int(getattr(info, "vmem_capacity_bytes", 0) or 0)
        if phys > 0:
            return int(min(phys // 2, 64 * 1024 * 1024))
    except Exception:  # conservative fallback
        pass
    return 32 * 1024 * 1024


def _sublane_pack(itemsize: int) -> int:
    # rows per vreg for this dtype: 8 (f32) / 16 (bf16) / 32 (int8/fp8)
    return max(8, 32 // itemsize)


def _choose_col_tile(cols, align, cap, want_split):
    """Pick a lane (last-dim) tile width.

    Valid tiles: tc == cols (full extent) or (tc % align == 0 and tc <= cols),
    with `align` itself a multiple of 128.  Preference: divides cols (no
    padding mask) > as wide as possible (lane-dense stores) > >= 2 column
    blocks when want_split.  Returns (tc, needs_mask).
    """
    cap = max(align, min(cap, cols))
    if cols <= cap and not (want_split and cols >= 2 * align):
        return cols, False
    # widest aligned divisor of cols (only within 4x of the cap, to avoid
    # degenerate tiny tiles when cols has no convenient divisor)
    t = (cap // align) * align
    floor_t = max(align, ((cap // 4) // align) * align)
    while t >= floor_t:
        if cols % t == 0 and (not want_split or t < cols):
            return t, False
        t -= align
    # no aligned divisor: padded (masked) last block
    if cols < align:
        return cols, False
    t = (cap // align) * align
    if want_split and t >= cols:
        t = max(align, (cols // (2 * align)) * align)
    return t, (cols % t != 0)


def _choose_2d_tiles(rows, cols, itemsize, usable_vmem):
    """Row/column tile for the [rows, cols] lane-dense layout.

    Block elements are budgeted so that 2x-in + 2x-out double buffers plus
    ~4 block-sized f32 temporaries (x, x_next, x_prev, partial) fit VMEM.
    """
    pack = _sublane_pack(itemsize)
    budget_elems = max(pack * 128, usable_vmem // (4 * itemsize + 20))
    col_cap = min(_MAX_LANE_TILE, max(128, ((budget_elems // pack) // 128) * 128))
    tc, mask = _choose_col_tile(cols, 128, col_cap, want_split=False)
    if rows <= pack:
        tr = rows
    else:
        tr = min(rows, max(pack, ((budget_elems // tc) // pack) * pack))
    if pl.cdiv(cols, tc) * pl.cdiv(rows, tr) < _MIN_GRID_BLOCKS:
        if rows >= 2 * pack:
            # split rows so both v7x TensorCores get a block
            tr = ((-(-rows // 2) + pack - 1) // pack) * pack
        else:
            tc, mask = _choose_col_tile(cols, 128, col_cap, want_split=True)
    return tr, tc, mask


def _choose_3d_col_tile(p, cols, d, itemsize, usable_vmem):
    """Column tile for the seq-first path ([P, Q*D] with P <= 32 rows).

    tc must be a multiple of D (so one periodic (P, tc) table serves every
    column block) and a multiple of 128 (or the full extent).
    """
    align = (d * 128) // math.gcd(d, 128)
    # per column: P activations (in/out double-buffered + f32 temps) and
    # 3 f32 tables double-buffered on >= 8 physical sublanes.
    denom = p * (4 * itemsize + 20) + 24 * max(p, 8)
    budget_cols = max(align, usable_vmem // denom)
    col_cap = min(max(_MAX_LANE_TILE, align),
                  max(align, (budget_cols // align) * align))
    # TODO(synk): a pathological d_model whose lcm with 128 is huge could
    # exceed the VMEM budget; power-of-two / multiple-of-64 d_model are fine.
    return _choose_col_tile(cols, align, col_cap, want_split=True)


# ----------------------------------------------------------------------------
# Kernel (shared by both layout paths)
# ----------------------------------------------------------------------------
def _rope_lane_kernel(x_ref, cos_ref, sn_ref, sp_ref, o_ref, *,
                      total_cols, needs_col_mask):
    """out[r, j] = x[r,j]*cos2[j] + x[r,j+1]*sn[j] + x[r,j-1]*sp[j].

    cos2/sn/sp are duplicated / sign-masked interleaved f32 tables:
      cos2[2i] = cos2[2i+1] = cos_i,  sn[2i] = -sin_i, sn[2i+1] = 0,
      sp[2i]  = 0,            sp[2i+1] = +sin_i,
    so the even/odd rotation is two XLU lane rolls (free slot) plus pure VPU
    mul/adds; the activation is read once and written once, interleaved.
    Block-edge roll wraparound is harmless because every block starts on an
    even global column, where the wrapped value meets a zero coefficient.
    """
    x = x_ref[...].astype(jnp.float32)
    tc = x.shape[-1]
    if needs_col_mask:
        # last column block is padded: zero the garbage so the lane rolls
        # cannot leak NaN/Inf into the final valid pair.
        col = pl.program_id(0) * tc + jax.lax.broadcasted_iota(
            jnp.int32, x.shape, 1)
        x = jnp.where(col < total_cols, x, 0.0)
    # pltpu.roll follows the jnp.roll convention: out[j] = x[(j - shift) % n]
    x_next = pltpu.roll(x, shift=tc - 1, axis=1)   # x_next[:, j] = x[:, j + 1]
    x_prev = pltpu.roll(x, shift=1, axis=1)        # x_prev[:, j] = x[:, j - 1]
    out = x * cos_ref[...] + x_next * sn_ref[...] + x_prev * sp_ref[...]
    o_ref[...] = out.astype(o_ref.dtype)


# ----------------------------------------------------------------------------
# Wrappers
# ----------------------------------------------------------------------------
def _rope_positions_axis1(x, cos2, sn, sp, offset):
    """Positions along axis 1 of x: [B, S, D] (PyTorch heuristic did NOT fire)."""
    B, S, D = x.shape
    C = S * D
    isz = jnp.dtype(x.dtype).itemsize
    vmem_limit = _vmem_limit_bytes()
    tr, tc, needs_mask = _choose_2d_tiles(B, C, isz, vmem_limit - _VMEM_MARGIN_BYTES)
    # pair-alignment invariant: every column-block start must be even
    assert (pl.cdiv(C, tc) == 1) or (tc % 2 == 0)

    # static offset slice + free (contiguous) reshape to a lane-dense layout
    c2 = jax.lax.slice_in_dim(cos2, offset, offset + S, axis=0).reshape(1, C)
    a = jax.lax.slice_in_dim(sn, offset, offset + S, axis=0).reshape(1, C)
    b = jax.lax.slice_in_dim(sp, offset, offset + S, axis=0).reshape(1, C)
    x2 = x.reshape(B, C)

    n_c = pl.cdiv(C, tc)
    n_b = pl.cdiv(B, tr)
    kernel = functools.partial(_rope_lane_kernel,
                               total_cols=C, needs_col_mask=needs_mask)

    out2 = pl.pallas_call(
        kernel,
        out_shape=jax.ShapeDtypeStruct((B, C), x.dtype),
        grid_spec=pltpu.PrefetchScalarGridSpec(
            num_scalar_prefetch=0,
            # column blocks OUTER, row blocks INNER: the table block index
            # only changes with the outer axis, so the tables are not
            # re-fetched across the whole row sweep.
            grid=(n_c, n_b),
            in_specs=[
                pl.BlockSpec((tr, tc), lambda c, r: (r, c)),
                pl.BlockSpec((1, tc), lambda c, r: (0, c)),
                pl.BlockSpec((1, tc), lambda c, r: (0, c)),
                pl.BlockSpec((1, tc), lambda c, r: (0, c)),
            ],
            out_specs=pl.BlockSpec((tr, tc), lambda c, r: (r, c)),
        ),
        compiler_params=pltpu.CompilerParams(
            dimension_semantics=("parallel", "parallel"),
            vmem_limit_bytes=vmem_limit,
        ),
        cost_estimate=pl.CostEstimate(
            flops=5 * B * C,
            transcendentals=0,
            bytes_accessed=2 * B * C * isz + 3 * C * 4,
        ),
    )(x2, c2, a, b)
    return out2.reshape(B, S, D)


def _rope_positions_axis0(x, cos2, sn, sp, offset):
    """Positions along axis 0 of x: [P, Q, D] (heuristic fired, so P <= 32).

    Folds away PyTorch's transpose(0,1)...transpose(0,1) round-trip AND
    presents the block lane-dense as [P, Q*D]; the per-position tables are
    periodic with period D along the flattened axis, so one (P, tc) table
    block (tc a multiple of D) serves every column block.
    """
    P, Q, D = x.shape
    C = Q * D
    isz = jnp.dtype(x.dtype).itemsize
    vmem_limit = _vmem_limit_bytes()
    tc, needs_mask = _choose_3d_col_tile(P, C, D, isz,
                                         vmem_limit - _VMEM_MARGIN_BYTES)
    assert tc % D == 0
    assert (pl.cdiv(C, tc) == 1) or (tc % 2 == 0)

    reps = tc // D
    c2 = jnp.tile(jax.lax.slice_in_dim(cos2, offset, offset + P, axis=0), (1, reps))
    a = jnp.tile(jax.lax.slice_in_dim(sn, offset, offset + P, axis=0), (1, reps))
    b = jnp.tile(jax.lax.slice_in_dim(sp, offset, offset + P, axis=0), (1, reps))
    x2 = x.reshape(P, C)

    n_c = pl.cdiv(C, tc)
    kernel = functools.partial(_rope_lane_kernel,
                               total_cols=C, needs_col_mask=needs_mask)

    out2 = pl.pallas_call(
        kernel,
        out_shape=jax.ShapeDtypeStruct((P, C), x.dtype),
        grid_spec=pltpu.PrefetchScalarGridSpec(
            num_scalar_prefetch=0,
            grid=(n_c,),
            in_specs=[
                pl.BlockSpec((P, tc), lambda c: (0, c)),
                pl.BlockSpec((P, tc), lambda c: (0, 0)),  # same block ∀ c -> 1 fetch
                pl.BlockSpec((P, tc), lambda c: (0, 0)),
                pl.BlockSpec((P, tc), lambda c: (0, 0)),
            ],
            out_specs=pl.BlockSpec((P, tc), lambda c: (0, c)),
        ),
        compiler_params=pltpu.CompilerParams(
            dimension_semantics=("parallel",),
            vmem_limit_bytes=vmem_limit,
        ),
        cost_estimate=pl.CostEstimate(
            flops=5 * P * C,
            transcendentals=0,
            bytes_accessed=2 * P * C * isz + 3 * P * tc * 4,
        ),
    )(x2, c2, a, b)
    return out2.reshape(P, Q, D)


class RotaryPositionalEmbeddingPallas:
    """JAX/Pallas port of the PyTorch RotaryPositionalEmbedding (eval forward)."""

    def __init__(self, d_model: int, dropout: float = 0.1,
                 max_len: int = 5000, base: int = 10000):
        if d_model % 2 != 0:
            raise ValueError("d_model must be even for rotary embeddings")
        self.d_model = d_model
        self.max_len = max_len
        self.base = base
        self.dropout_p = dropout

        pos = jnp.arange(0, max_len, dtype=jnp.float32)
        inv = jnp.float32(base) ** (
            -jnp.arange(0, d_model, 2, dtype=jnp.float32) / d_model)
        freqs = jnp.outer(pos, inv)                    # [max_len, d_model//2]
        cos = jnp.cos(freqs)
        sin = jnp.sin(freqs)
        # plain tables (parity with PyTorch buffers; used by the reference check)
        self.freqs_cos = cos
        self.freqs_sin = sin
        # interleaved-layout tables for the fused kernel, hoisted to __init__
        # (kept f32; the kernel multiplies in f32 and casts on the final store)
        zeros = jnp.zeros_like(sin)
        self.cos2 = jnp.repeat(cos, 2, axis=-1)                                   # [L, D]
        self.sin_next = jnp.stack([-sin, zeros], axis=-1).reshape(max_len, d_model)
        self.sin_prev = jnp.stack([zeros, sin], axis=-1).reshape(max_len, d_model)

    def __call__(self, x, offset: int = 0):
        if x.ndim != 3 or x.shape[-1] != self.d_model:
            raise ValueError("expected rank-3 input [*, *, d_model]")

        # PyTorch heuristic: transpose(0,1) when dim0 <= dim1 and dim0 <= 32,
        # apply RoPE along (new) axis 1, transpose back.  Net effect: positions
        # run along ORIGINAL axis 0 in that case; we apply them there directly.
        pos_axis_is_0 = (x.shape[0] <= x.shape[1]) and (x.shape[0] <= 32)
        seq_len = x.shape[0] if pos_axis_is_0 else x.shape[1]
        if seq_len + offset > self.max_len:
            raise ValueError(
                f"Sequence length ({seq_len + offset}) exceeds maximum "
                f"length ({self.max_len})")

        # TODO(synk): offset is a static Python int (matching the PyTorch API);
        # a dynamic decode-time offset would be routed via scalar prefetch.
        if pos_axis_is_0:
            return _rope_positions_axis0(x, self.cos2, self.sin_next,
                                         self.sin_prev, offset)
        return _rope_positions_axis1(x, self.cos2, self.sin_next,
                                     self.sin_prev, offset)


# ----------------------------------------------------------------------------
# Pure-JAX mirror of the PyTorch forward (eval mode) for validation.
# ----------------------------------------------------------------------------
def _reference_forward(x, freqs_cos, freqs_sin, offset=0):
    is_seq_first = False
    if x.shape[0] <= x.shape[1] and x.shape[0] <= 32:
        x = jnp.swapaxes(x, 0, 1)
        is_seq_first = True
    seq_len = x.shape[1]
    cos = freqs_cos[offset:offset + seq_len][None, :, :]
    sin = freqs_sin[offset:offset + seq_len][None, :, :]
    xr = x.reshape(x.shape[0], x.shape[1], -1, 2)
    xe, xo = xr[..., 0], xr[..., 1]
    er = xe * cos - xo * sin
    orot = xe * sin + xo * cos
    out = jnp.stack([er, orot], axis=-1).reshape(x.shape)
    if is_seq_first:
        out = jnp.swapaxes(out, 0, 1)
    return out


if __name__ == "__main__":
    d_model = 32
    rope = RotaryPositionalEmbeddingPallas(d_model=d_model, dropout=0.1,
                                           max_len=64, base=10000)
    key = jax.random.PRNGKey(0)
    k1, k2, k3 = jax.random.split(key, 3)

    # Case 1: [2, 8, 32] -> heuristic fires (positions along axis 0),
    # lane-dense seq-first path with periodic tables, 2 column blocks.
    x1 = jax.random.normal(k1, (2, 8, d_model), dtype=jnp.float32)
    y1 = jax.block_until_ready(rope(x1, offset=0))
    r1 = _reference_forward(x1, rope.freqs_cos, rope.freqs_sin, offset=0)
    assert y1.shape == x1.shape and y1.dtype == x1.dtype
    assert jnp.allclose(y1, r1, atol=1e-5, rtol=1e-5), "case1 mismatch vs reference"

    # Case 2: [40, 8, 32], offset=3 -> heuristic does NOT fire
    # (positions along axis 1; flattened lane-dense path, row-split grid).
    x2 = jax.random.normal(k2, (40, 8, d_model), dtype=jnp.float32)
    y2 = jax.block_until_ready(rope(x2, offset=3))
    r2 = _reference_forward(x2, rope.freqs_cos, rope.freqs_sin, offset=3)
    assert y2.shape == x2.shape and y2.dtype == x2.dtype
    assert jnp.allclose(y2, r2, atol=1e-5, rtol=1e-5), "case2 mismatch vs reference"

    # Case 3: [12, 10, 32], offset=2 -> positions along axis 1, column-split
    # grid with a padded (masked) last column block.
    x3 = jax.random.normal(k3, (12, 10, d_model), dtype=jnp.float32)
    y3 = jax.block_until_ready(rope(x3, offset=2))
    r3 = _reference_forward(x3, rope.freqs_cos, rope.freqs_sin, offset=2)
    assert y3.shape == x3.shape and y3.dtype == x3.dtype
    assert jnp.allclose(y3, r3, atol=1e-5, rtol=1e-5), "case3 mismatch vs reference"

    print("KERNEL_OK")
</pallas_src>

<mosaic_0001>
module attributes {stable_mosaic.version = 11 : i64} {
  func.func @_rope_lane_kernel(%arg0: i32, %arg1: memref<2x128xf32, #tpu.memory_space<vmem>>, %arg2: memref<2x128xf32, #tpu.memory_space<vmem>>, %arg3: memref<2x128xf32, #tpu.memory_space<vmem>>, %arg4: memref<2x128xf32, #tpu.memory_space<vmem>>, %arg5: memref<2x128xf32, #tpu.memory_space<vmem>>) attributes {dimension_semantics = [#tpu.dimension_semantics<parallel>], iteration_bounds = array<i64: 2>, scalar_prefetch = 0 : i64, scratch_operands = 0 : i64, tpu.core_type = #tpu.core_type<tc>, window_params = [{transform_indices = @transform_0, window_bounds = array<i64: 2, 128>}, {pipeline_mode = #tpu.pipeline_mode<synchronous>, transform_indices = @transform_1, window_bounds = array<i64: 2, 128>}, {pipeline_mode = #tpu.pipeline_mode<synchronous>, transform_indices = @transform_2, window_bounds = array<i64: 2, 128>}, {pipeline_mode = #tpu.pipeline_mode<synchronous>, transform_indices = @transform_3, window_bounds = array<i64: 2, 128>}, {transform_indices = @transform_4, window_bounds = array<i64: 2, 128>}]} {
    %c0 = arith.constant 0 : index
    %c0_0 = arith.constant 0 : index
    %0 = vector.load %arg1[%c0, %c0_0] : memref<2x128xf32, #tpu.memory_space<vmem>>, vector<2x128xf32>
    %c127_i32 = arith.constant 127 : i32
    %1 = tpu.dynamic_rotate %0 by %c127_i32 dim 1 : vector<2x128xf32>, i32 -> vector<2x128xf32>
    %c1_i32 = arith.constant 1 : i32
    %2 = tpu.dynamic_rotate %0 by %c1_i32 dim 1 : vector<2x128xf32>, i32 -> vector<2x128xf32>
    %c0_1 = arith.constant 0 : index
    %c0_2 = arith.constant 0 : index
    %3 = vector.load %arg2[%c0_1, %c0_2] : memref<2x128xf32, #tpu.memory_space<vmem>>, vector<2x128xf32>
    %4 = arith.mulf %0, %3 : vector<2x128xf32>
    %c0_3 = arith.constant 0 : index
    %c0_4 = arith.constant 0 : index
    %5 = vector.load %arg3[%c0_3, %c0_4] : memref<2x128xf32, #tpu.memory_space<vmem>>, vector<2x128xf32>
    %6 = arith.mulf %1, %5 : vector<2x128xf32>
    %7 = arith.addf %4, %6 : vector<2x128xf32>
    %c0_5 = arith.constant 0 : index
    %c0_6 = arith.constant 0 : index
    %8 = vector.load %arg4[%c0_5, %c0_6] : memref<2x128xf32, #tpu.memory_space<vmem>>, vector<2x128xf32>
    %9 = arith.mulf %2, %8 : vector<2x128xf32>
    %10 = arith.addf %7, %9 : vector<2x128xf32>
    %c0_7 = arith.constant 0 : index
    %c0_8 = arith.constant 0 : index
    %11 = vector.load %arg5[%c0_7, %c0_8] : memref<2x128xf32, #tpu.memory_space<vmem>>, vector<2x128xf32>
    tpu.vector_store %arg5[%c0_7, %c0_8], %10 {strides = array<i32>} : memref<2x128xf32, #tpu.memory_space<vmem>>, vector<2x128xf32>,
    return
  }
  func.func @transform_0(%arg0: i32) -> (i32, i32) {
    %c0_i32 = arith.constant 0 : i32
    %c0_i32_0 = arith.constant 0 : i32
    return %c0_i32, %arg0 : i32, i32
  }
  func.func @transform_1(%arg0: i32) -> (i32, i32) {
    %c0_i32 = arith.constant 0 : i32
    %c0_i32_0 = arith.constant 0 : i32
    %c0_i32_1 = arith.constant 0 : i32
    return %c0_i32, %c0_i32_0 : i32, i32
  }
  func.func @transform_2(%arg0: i32) -> (i32, i32) {
    %c0_i32 = arith.constant 0 : i32
    %c0_i32_0 = arith.constant 0 : i32
    %c0_i32_1 = arith.constant 0 : i32
    return %c0_i32, %c0_i32_0 : i32, i32
  }
  func.func @transform_3(%arg0: i32) -> (i32, i32) {
    %c0_i32 = arith.constant 0 : i32
    %c0_i32_0 = arith.constant 0 : i32
    %c0_i32_1 = arith.constant 0 : i32
    return %c0_i32, %c0_i32_0 : i32, i32
  }
  func.func @transform_4(%arg0: i32) -> (i32, i32) {
    %c0_i32 = arith.constant 0 : i32
    %c0_i32_0 = arith.constant 0 : i32
    return %c0_i32, %arg0 : i32, i32
  }
}

</mosaic_0001>

<bundles_post_ra>
// kernel: tpu_custom_call.1
= control target key start
LH: loop header
LB: loop body
LE: loop exit
PB: predicated region body
PF: predicated region fallthrough
CT: control target
= control target key end

     0   :  { %9 = vsyncpa [#allocation3], 0  ;;  %s668_s0 = inlined_call_operand.hbm [shape: f32[2,256], index: 0, kind: input, shape index: {}]   ;;  %s669_s1 = inlined_call_operand.vmem [shape: f32[2,128], index: 1, kind: input, shape index: {}]   ;;  %s670_s2 = inlined_call_operand.vmem [shape: f32[2,128], index: 2, kind: input, shape index: {}]   ;;  %s671_s3 = inlined_call_operand.vmem [shape: f32[2,128], index: 3, kind: input, shape index: {}]   ;;  %s672_s4 = inlined_call_operand.hbm [shape: f32[2,256], index: 4, kind: output, shape index: {}]  }
   0x1   :  { %11 = vsyncpa [#allocation3 + $0x1], 0 }
   0x2   :  { %12 = vsyncpa [#allocation4], 0 }
   0x3   :  { %14 = vsyncpa [#allocation4 + $0x1], 0  ;;  %s498_s15 = smov 0   ;;  %s500_s16 = smov 0  }
   0x4   :  { %s502_s17 = smov 0   ;;  %s504_s18 = smov 0  }
   0x5 LB: > { %s519_s19 = sadd.s32 4294967295, %s467_s18   ;;  %s311_s20 = sadd.s32 4294967294, %s467_s18   ;;  %s467_s18 = sphi %s504_s18, %s687_s18   ;;  %s463_s17 = sphi %s502_s17, %s686_s17   ;;  %s459_s16 = sphi %s500_s16, %s685_s16   ;;  %s455_s15 = sphi %s498_s15, %s684_s15  }
   0x6   : > { %s523_s21 = sadd.s32 1, %s467_s18   ;;  %s27_s22 = sadd.s32 1, %s463_s17 }
   0x7   : > { %s24_s23 = ssub.s32 %s467_s18, %s523_s21  ;;  %p34_p0 = scmp.ne.s32.totalorder %s463_s17, %s459_s16 }
   0x8   : > { %p25_p1 = scmp.eq.s32.totalorder %s24_s23, 0  ;;  %p35_p2 = scmp.eq.s32.totalorder %s467_s18, 0 }
   0x9   : > { %p40_p3 = scmp.ne.s32.totalorder %s459_s16, %s455_s15  ;;  %p41_p4 = scmp.eq.s32.totalorder %s519_s19, 0 }
   0xa   : > { %s535_s24 = scalar_select %p25_p1, %s463_s17, %s27_s22  }
   0xb   : > { %p537_p5 = por %p35_p2, %p34_p0  ;;  %p541_p6 = por %p41_p4, %p40_p3 }
   0xc   : > { %p127_p7 = scmp.eq.s32.totalorder %s519_s19, 1  ;;  %p133_p8 = scmp.eq.s32.totalorder %s311_s20, 1 }
   0xd   : > { %p335_p10 = scmp.lt.s32.totalorder %s467_s18, 2  ;;  %s162_s29 = sand.u32 1, %s463_s17  }
   0xe   : > { %p548_p11 = por %p127_p7, %p34_p0  ;;  %p552_p12 = por %p133_p8, %p40_p3 }
   0xf   : > { %s315_s30 = sshll.u32 %s467_s18, 5  ;;  %s314_s5 = sshll.u32 %s162_s29, 1 }
  0x10   : > { %s676_s27 = scalar_select %p548_p11, 1, 0 }
  0x11   : > { %s677_s28 = scalar_select %p552_p12, 1, 0 }
  0x12   : > { %s561_s8 = scalar_lea.hbm %s668_s0, %s315_s30  ;;  %s166_s9 = scalar_lea.vmem [#allocation2], %s314_s5 }
  0x13   : > { %s173_s10 = sshll.u32 %s166_s9, 4  ;;  %p565_p13 = pnand %p335_p10, %p537_p5  ;;  %s569_s10 = int_to_ptr.vmem [resolvable:$true] %s173_s10 }
  0x14   : > { %s163_s12 = scalar_lea.sflag [#allocation3], %s162_s29  ;;  %s371_s13 = scalar_lea.hbm %s561_s8, 32 }
  0x15   : > { %p372_p2 = scmp.ne.s32.totalorder %s561_s8, %s371_s13  ;;  %p373_p3 = pneg %p565_p13 }
  0x16   : > { %s376_s22 = scalar_lea.hbm %s668_s0, 64  ;;  %p377_p5 = scmp.lt.u32.totalorder %s561_s8, %s668_s0 }
  0x17   : > { %p374_p4 = pnand %p373_p3, %p372_p2  ;;  %p378_p8 = scmp.lt.u32.totalorder %s376_s22, %s371_s13 }
  0x18   : > { %p380_p9 = scmp.lt.u32.totalorder %s371_s13, %s561_s8 }
  0x19   : > { %p375_p7 = pneg %p374_p4  ;;  %p379_p10 = por %p378_p8, %p377_p5 }
  0x1b   : > { %p381_p0 = por %p380_p9, %p379_p10 }
  0x1d   : > { %p382_p1 = pnand %p381_p0, %p375_p7 }
  0x1f   : > { %385 = shalt.err (!%p382_p1)
}
  0x20   : > { %s386_s29 = scalar_lea.vmem %s569_s10, 32  ;;  %s469_s30 = smov [#allocation2]  }
  0x21   : > { %p387_p2 = scmp.ne.s32.totalorder %s569_s10, %s386_s29  ;;  %s391_s5 = sshll.u32 %s469_s30, 4  ;;  %s392_s5 = int_to_ptr.vmem [resolvable:$false] %s391_s5 }
  0x22   : > { %s393_s6 = scalar_lea.vmem %s392_s5, 64  ;;  %p394_p11 = scmp.lt.s32.totalorder %s569_s10, %s392_s5 }
  0x23   : > { %p389_p4 = pnand %p387_p2, %p373_p3  ;;  %p395_p5 = scmp.lt.s32.totalorder %s393_s6, %s386_s29 }
  0x25   : > { %p390_p12 = pneg %p389_p4  ;;  %p396_p8 = por %p395_p5, %p394_p11 }
  0x27   : > { %p397_p9 = pnand %p396_p8, %p390_p12 }
  0x29   : > { %400 = shalt.err (!%p397_p9)
}
  0x2a   : > { %330 = dma.hbm_to_vmem [thread:$0]  (!%p565_p13), %s561_s8, 32, %s569_s10, %s163_s12  }
  0x2b   : > { %p679_p0 = scmp.lt.s32.totalorder %s467_s18, 3  ;;  %p680_p1 = scmp.ge.s32.totalorder %s467_s18, 1 }
  0x2d   : > { %p179_p3 = pnand %p680_p1, %p679_p0 }
  0x2e   : > { %s603_s7 = sand.u32 (!%p179_p3), 1, %s459_s16  }
  0x2f   : > { %182 = sbr.rel (%p179_p3) target bundleno = 193 (0xc1), region = 36  ;;  %s317_s9 = sshll.u32 (!%p179_p3), %s603_s7, 1 }
  0x30   : > { %s185_s13 = scalar_lea.sflag (!%p179_p3), [#allocation3], %s603_s7  ;;  %s188_s14 = scalar_lea.vmem (!%p179_p3), [#allocation2], %s317_s9 }
  0x36   : > { %446 = dma.done.wait (%p541_p6), %s185_s13, 32  }
  0x37   : > { %448 = vsyncadd (%p541_p6), %s185_s13, 4294967264  ;;  %v213_v0 = vld [vmem:[%s188_s14] sm:$0x3]  ;;  %s470_s8 = smov 127   ;;  %s471_s10 = smov 1  }
  0x38   : > { %214 = vrot.lane.b32.xlu0 %v213_v0, %s470_s8  ;;  %v218_v1 = vld [vmem:[%s669_s1] sm:$0x3]  ;;  %s320_s25 = sshll.u32 %s519_s19, 5  ;;  %s212_s29 = scalar_lea.vmem [#allocation5], %s317_s9 }
  0x39   : > { %v220_v2 = vld [vmem:[%s670_s2] sm:$0x3]  ;;  %v219_v4 = vmul.f32 %v218_v1, %v213_v0  ;;  %s241_s30 = sshll.u32 %s212_s29, 4  ;;  %s624_s13 = scalar_lea.hbm %s672_s4, %s320_s25  ;;  %s626_s30 = int_to_ptr.vmem [resolvable:$true] %s241_s30 }
  0x3a   : > { %v223_v6 = vld [vmem:[%s671_s3] sm:$0x3]  ;;  %s228_s14 = scalar_lea.sflag [#allocation4], %s603_s7  ;;  %s401_s8 = scalar_lea.vmem %s626_s30, 32 }
  0x3b   : > { %p402_p6 = scmp.ne.s32.totalorder %s626_s30, %s401_s8  ;;  %p681_p11 = scmp.ne.s32.totalorder %s676_s27, 0 }
  0x3c   : > { %216 = vrot.lane.b32.xlu0 %v213_v0, %s471_s10  ;;  %s472_s19 = smov [#allocation5]  }
  0x3d   : > { %p403_p12 = pnand %p402_p6, %p681_p11  ;;  %s405_s9 = sshll.u32 %s472_s19, 4  ;;  %s406_s9 = int_to_ptr.vmem [resolvable:$false] %s405_s9 }
  0x3e   : > { %s407_s10 = scalar_lea.vmem %s406_s9, 64  ;;  %p408_p7 = scmp.lt.s32.totalorder %s626_s30, %s406_s9 }
  0x3f   : > { %p404_p13 = pneg %p403_p12  ;;  %p409_p10 = scmp.lt.s32.totalorder %s407_s10, %s401_s8 }
  0x41   : > { %p410_p2 = por %p409_p10, %p408_p7 }
  0x43   : > { %p411_p4 = pnand %p410_p2, %p404_p13 }
  0xaa   : > { %v215_v3 = vpop.permute.xlu0 %214 }
  0xab   : > { %v221_v5 = vmul.f32 %v220_v2, %v215_v3 }
  0xad   : > { %v222_v8 = vadd.f32 %v221_v5, %v219_v4 }
  0xae   : > { %v217_v7 = vpop.permute.xlu0 %216 }
  0xaf   : > { %v224_v9 = vmul.f32 %v223_v6, %v217_v7 }
  0xb1   : > { %v225_v10 = vadd.f32 %v224_v9, %v222_v8 }
  0xb3   : > { %226 = vst [vmem:[%s212_s29] sm:$0x3] %v225_v10 }
  0xb4   : > { %414 = shalt.err (!%p411_p4)
}
  0xb5   : > { %s415_s7 = scalar_lea.hbm %s624_s13, 32  ;;  %s419_s20 = scalar_lea.hbm %s672_s4, 64 }
  0xb6   : > { %p416_p5 = scmp.ne.s32.totalorder %s624_s13, %s415_s7  ;;  %p420_p0 = scmp.lt.u32.totalorder %s624_s13, %s672_s4 }
  0xb7   : > { %p421_p1 = scmp.lt.u32.totalorder %s419_s20, %s415_s7  ;;  %p423_p6 = scmp.lt.u32.totalorder %s415_s7, %s624_s13 }
  0xb8   : > { %p417_p8 = pnand %p416_p5, %p681_p11 }
  0xb9   : > { %p422_p3 = por %p421_p1, %p420_p0 }
  0xba   : > { %p418_p9 = pneg %p417_p8 }
  0xbb   : > { %p424_p12 = por %p423_p6, %p422_p3 }
  0xbd   : > { %p425_p13 = pnand %p424_p12, %p418_p9 }
  0xbf   : > { %428 = shalt.err (!%p425_p13)
}
  0xc0   : > { %325 = dma.vmem_to_hbm [thread:$0]  (%p681_p11), %s626_s30, 32, %s624_s13, %s228_s14  }
  0xc1 PF: > { %s253_s23 = sand.u32 1, %s455_s15   ;;  %p682_p7 = scmp.ne.s32.totalorder %s677_s28, 0 }
  0xc2   : > { %p683_p10 = scmp.ge.s32.totalorder %s467_s18, 2  ;;  %s254_s25 = scalar_lea.sflag [#allocation4], %s253_s23 }
  0xc4   : > { %p332_p2 = pnand %p683_p10, %p682_p7 }
  0xc6   : > { %450 = dma.done.wait (!%p332_p2), %s254_s25, 32  }
  0xc7   : > { %452 = vsyncadd (!%p332_p2), %s254_s25, 4294967264  ;;  %p17_p4 = scmp.ge.s32.totalorder %s523_s21, 4   ;;  %s684_s15 = smov %s459_s16 }
  0xc8   : > { %s685_s16 = smov %s463_s17  ;;  %s686_s17 = smov %s535_s24 }
  0xc9   : > { %s687_s18 = smov %s523_s21  ;;  %19 = sbr.rel (!%p17_p4) target bundleno = 5 (0x5), region = 81 }
  0xd0   :  { %259 = vsyncpa [#allocation3], 1 }
  0xd1   :  { %261 = vsyncpa [#allocation3 + $0x1], 1 }
  0xd2   :  { %262 = vsyncpa [#allocation4], 1 }
  0xd3   :  { %264 = vsyncpa [#allocation4 + $0x1], 1 }

</bundles_post_ra>
